<compile_context>
chip_gen: v7x
topology: tpu7x:2x2x1
jax: 0.10.0
libtpu: 0.0.40
codegen_flags: <defaults>
</compile_context>

<pallas_src>
import jax
import jax.numpy as jnp
from jax.experimental import pallas as pl
from jax.experimental.pallas import tpu as pltpu

NUM_CLASSES = 32
LANES = 128          # lane-dense padded class dimension
MIN_TILE_M = 16      # bf16 sublane-packing granularity


def _round_up(x, m):
    return (x + m - 1) // m * m


def temperature_scaling_kernel(temp_ref, x_ref, w_ref, b_ref, o_ref):
    # temp_ref : SMEM (1,)   f32   scalar temperature parameter
    # x_ref    : VMEM (TILE_M, F)     bf16  activation tile (streamed)
    # w_ref    : VMEM (F, 128)        bf16  weight (resident, zero-padded cols)
    # b_ref    : VMEM (1, 128)        f32   bias (zero-padded cols)
    # o_ref    : VMEM (TILE_M, 128)   f32   temperature-scaled logits (padded)
    acc = jnp.dot(x_ref[...], w_ref[...],
                  preferred_element_type=jnp.float32)      # f32 MXU accumulate
    inv_t = 1.0 / temp_ref[0]                               # one scalar recip
    o_ref[...] = ((acc + b_ref[...]) * inv_t).astype(o_ref.dtype)


def temperature_scaling_forward(x_nchw, w, b, temperature, *,
                                max_tile_m=256,
                                vmem_budget_bytes=24 * 1024 * 1024):
    """x_nchw: (N, C, H, W); w: (F, 32); b: (32,); temperature: (1,).

    Returns (N, NUM_CLASSES) temperature-scaled logits (f32).
    """
    n = x_nchw.shape[0]
    f = 1
    for d in x_nchw.shape[1:]:
        f *= d

    # ---- Batch-tile sizing against a conservative VMEM budget -------------
    # resident bf16 weight + 2x (double-buffered) bf16 x-row + 2x f32 out-row
    w_bytes = f * LANES * 2
    per_row = 2 * (f * 2) + 2 * (LANES * 4)
    tile_cap = max(MIN_TILE_M, (vmem_budget_bytes - w_bytes) // max(per_row, 1))
    tile_m = min(max_tile_m, tile_cap, _round_up(n, MIN_TILE_M))
    tile_m = max(MIN_TILE_M, (tile_m // MIN_TILE_M) * MIN_TILE_M)
    n_pad = _round_up(n, tile_m)

    # ---- Pad / cast operands ----------------------------------------------
    # bf16 streaming halves HBM traffic; epilogue and accumulator stay f32.
    x_flat = x_nchw.reshape(n, f)
    x_pad = jnp.zeros((n_pad, f), dtype=jnp.bfloat16).at[:n].set(
        x_flat.astype(jnp.bfloat16))
    w_pad = jnp.zeros((f, LANES), dtype=jnp.bfloat16).at[:, :NUM_CLASSES].set(
        w.astype(jnp.bfloat16))
    b_pad = jnp.zeros((1, LANES), dtype=jnp.float32).at[0, :NUM_CLASSES].set(
        b.astype(jnp.float32))
    temp = temperature.reshape(1).astype(jnp.float32)

    grid = (n_pad // tile_m,)
    out_padded = pl.pallas_call(
        temperature_scaling_kernel,
        out_shape=jax.ShapeDtypeStruct((n_pad, LANES), jnp.float32),
        grid=grid,
        in_specs=[
            pl.BlockSpec(memory_space=pltpu.SMEM),               # temperature
            pl.BlockSpec((tile_m, f), lambda i: (i, 0)),          # x tile
            pl.BlockSpec((f, LANES), lambda i: (0, 0)),           # weight (resident)
            pl.BlockSpec((1, LANES), lambda i: (0, 0)),           # bias (resident)
        ],
        out_specs=pl.BlockSpec((tile_m, LANES), lambda i: (i, 0)),
        compiler_params=pltpu.CompilerParams(
            dimension_semantics=("parallel",)),
    )(temp, x_pad, w_pad, b_pad)

    return out_padded[:n, :NUM_CLASSES]


if __name__ == "__main__":
    key = jax.random.PRNGKey(0)
    kx, kw, kb = jax.random.split(key, 3)

    # Small shapes consistent with an NCHW image-classifier input.
    N, C, H, W = 2, 4, 16, 16
    F = C * H * W

    x = jax.random.normal(kx, (N, C, H, W), dtype=jnp.float32)

    # Deterministic parameter init (synthetic stand-in for the VGG head).
    w = jax.random.normal(kw, (F, NUM_CLASSES), dtype=jnp.float32) * 0.02
    b = jax.random.normal(kb, (NUM_CLASSES,), dtype=jnp.float32) * 0.01
    temperature = jnp.ones((1,), dtype=jnp.float32) * 1.5   # as in __init__

    out = temperature_scaling_forward(x, w, b, temperature)
    out = jax.block_until_ready(out)

    # Reference check in plain JAX (inputs rounded to bf16 to mirror the
    # kernel's streaming dtype; accumulation/epilogue are f32 in both).
    x_bf = x.reshape(N, -1).astype(jnp.bfloat16).astype(jnp.float32)
    w_bf = w.astype(jnp.bfloat16).astype(jnp.float32)
    ref = (x_bf @ w_bf + b) / temperature

    assert out.shape == (N, NUM_CLASSES)
    assert jnp.allclose(out, ref, atol=2e-3, rtol=2e-3), (
        float(jnp.max(jnp.abs(out - ref))))

    print("KERNEL_OK")
</pallas_src>

<mosaic_0001>
module attributes {stable_mosaic.version = 11 : i64} {
  func.func @temperature_scaling_kernel(%arg0: i32, %arg1: memref<1xf32, #tpu.memory_space<smem>>, %arg2: memref<16x1024xbf16, #tpu.memory_space<vmem>>, %arg3: memref<1024x128xbf16, #tpu.memory_space<vmem>>, %arg4: memref<1x128xf32, #tpu.memory_space<vmem>>, %arg5: memref<16x128xf32, #tpu.memory_space<vmem>>) attributes {dimension_semantics = [#tpu.dimension_semantics<parallel>], iteration_bounds = array<i64: 1>, scalar_prefetch = 0 : i64, scratch_operands = 0 : i64, tpu.core_type = #tpu.core_type<tc>, window_params = [{transform_indices = @transform_0, window_bounds = array<i64: 1>}, {transform_indices = @transform_1, window_bounds = array<i64: 16, 1024>}, {pipeline_mode = #tpu.pipeline_mode<synchronous>, transform_indices = @transform_2, window_bounds = array<i64: 1024, 128>}, {pipeline_mode = #tpu.pipeline_mode<synchronous>, transform_indices = @transform_3, window_bounds = array<i64: 1, 128>}, {transform_indices = @transform_4, window_bounds = array<i64: 16, 128>}]} {
    %c0 = arith.constant 0 : index
    %c0_0 = arith.constant 0 : index
    %0 = vector.load %arg2[%c0, %c0_0] : memref<16x1024xbf16, #tpu.memory_space<vmem>>, vector<16x1024xbf16>
    %c0_1 = arith.constant 0 : index
    %c0_2 = arith.constant 0 : index
    %1 = vector.load %arg3[%c0_1, %c0_2] : memref<1024x128xbf16, #tpu.memory_space<vmem>>, vector<1024x128xbf16>
    %cst = arith.constant dense<0.000000e+00> : vector<16x128xf32>
    %2 = tpu.matmul %0, %1, %cst {dimension_numbers = #tpu.dot_dimension_numbers<[1], [0], [0], [1], [0, 0, 1, 1], [], []>} : vector<16x1024xbf16>, vector<1024x128xbf16>, vector<16x128xf32> -> vector<16x128xf32>
    %c0_3 = arith.constant 0 : index
    %3 = memref.load %arg1[%c0_3] : memref<1xf32, #tpu.memory_space<smem>>
    %cst_4 = arith.constant 1.000000e+00 : f32
    %4 = arith.divf %cst_4, %3 : f32
    %c0_5 = arith.constant 0 : index
    %c0_6 = arith.constant 0 : index
    %5 = vector.load %arg4[%c0_5, %c0_6] : memref<1x128xf32, #tpu.memory_space<vmem>>, vector<1x128xf32>
    %6 = vector.broadcast %5 : vector<1x128xf32> to vector<16x128xf32>
    %7 = arith.addf %2, %6 : vector<16x128xf32>
    %8 = vector.broadcast %4 : f32 to vector<16x128xf32>
    %9 = arith.mulf %7, %8 : vector<16x128xf32>
    %c0_7 = arith.constant 0 : index
    %c0_8 = arith.constant 0 : index
    %10 = vector.load %arg5[%c0_7, %c0_8] : memref<16x128xf32, #tpu.memory_space<vmem>>, vector<16x128xf32>
    tpu.vector_store %arg5[%c0_7, %c0_8], %9 {strides = array<i32>} : memref<16x128xf32, #tpu.memory_space<vmem>>, vector<16x128xf32>,
    return
  }
  func.func @transform_0(%arg0: i32) -> i32 {
    %c0_i32 = arith.constant 0 : i32
    %c0_i32_0 = arith.constant 0 : i32
    return %c0_i32 : i32
  }
  func.func @transform_1(%arg0: i32) -> (i32, i32) {
    %c0_i32 = arith.constant 0 : i32
    %c0_i32_0 = arith.constant 0 : i32
    return %arg0, %c0_i32 : i32, i32
  }
  func.func @transform_2(%arg0: i32) -> (i32, i32) {
    %c0_i32 = arith.constant 0 : i32
    %c0_i32_0 = arith.constant 0 : i32
    %c0_i32_1 = arith.constant 0 : i32
    return %c0_i32, %c0_i32_0 : i32, i32
  }
  func.func @transform_3(%arg0: i32) -> (i32, i32) {
    %c0_i32 = arith.constant 0 : i32
    %c0_i32_0 = arith.constant 0 : i32
    %c0_i32_1 = arith.constant 0 : i32
    return %c0_i32, %c0_i32_0 : i32, i32
  }
  func.func @transform_4(%arg0: i32) -> (i32, i32) {
    %c0_i32 = arith.constant 0 : i32
    %c0_i32_0 = arith.constant 0 : i32
    return %arg0, %c0_i32 : i32, i32
  }
}

</mosaic_0001>

<bundles_post_ra>
// kernel: tpu_custom_call.1
= control target key start
LH: loop header
LB: loop body
LE: loop exit
PB: predicated region body
PF: predicated region fallthrough
CT: control target
= control target key end

     0   :  { %10 = vsyncpa [#allocation4], 0  ;;  %s1192_s0 = inlined_call_operand.<no memory space> [shape: f32[1], index: 0, kind: input, shape index: {}]   ;;  %s1193_s1 = inlined_call_operand.hbm [shape: bf16[16,1024], index: 1, kind: input, shape index: {}]   ;;  %s1194_s2 = inlined_call_operand.hbm [shape: bf16[1024,128], index: 2, kind: input, shape index: {}]   ;;  %s1195_s3 = inlined_call_operand.vmem [shape: f32[1,128], index: 3, kind: input, shape index: {}]   ;;  %s1196_s4 = inlined_call_operand.hbm [shape: f32[16,128], index: 4, kind: output, shape index: {}]  }
   0x1   :  { %11 = vsyncpa [#allocation7], 0 }
   0x2   :  { %12 = vsyncpa [#allocation5], 0  ;;  %s1116_s15 = smov [#allocation3]   ;;  %s1044_s19 = scalar_lea.hbm %s1193_s1, 1024 }
   0x3   :  { %s20_s16 = sshll.u32 %s1116_s15, 4  ;;  %p1045_p0 = scmp.ne.s32.totalorder %s1193_s1, %s1044_s19  ;;  %s21_s16 = int_to_ptr.vmem [resolvable:$true] %s20_s16 }
   0x4   :  { %p1048_p1 = scmp.lt.u32.totalorder %s1044_s19, %s1193_s1 }
   0x6   :  { %p1050_p2 = pnand %p1048_p1, %p1045_p0 }
   0x8   :  { %1053 = shalt.err (!%p1050_p2)
}
   0x9   :  { %s1054_s24 = scalar_lea.vmem %s21_s16, 1024  ;;  %p1059_p4 = scmp.lt.s32.totalorder %s21_s16, %s21_s16 }
   0xa   :  { %p1055_p3 = scmp.ne.s32.totalorder %s21_s16, %s1054_s24  ;;  %p1060_p5 = scmp.lt.s32.totalorder %s1054_s24, %s1054_s24 }
   0xc   :  { %p1061_p6 = por %p1060_p5, %p1059_p4 }
   0xe   :  { %p1062_p7 = pnand %p1061_p6, %p1055_p3 }
  0x10   :  { %1065 = shalt.err (!%p1062_p7)
}
  0x11   :  { %s1117_s25 = smov 512   ;;  %s1118_s26 = smov 32  }
  0x12   :  { %26 = dma.hbm_to_vmem [thread:$0]  %s1193_s1, 1024, %s21_s16, [#allocation4], %s1117_s25, %s1117_s25, %s1118_s26  }
  0x13   :  { %s1119_s29 = smov [#allocation6]   ;;  %s1066_s7 = scalar_lea.hbm %s1194_s2, 8192 }
  0x14   :  { %s32_s30 = sshll.u32 %s1119_s29, 4  ;;  %p1067_p8 = scmp.ne.s32.totalorder %s1194_s2, %s1066_s7  ;;  %s33_s30 = int_to_ptr.vmem [resolvable:$true] %s32_s30 }
  0x15   :  { %p1070_p9 = scmp.lt.u32.totalorder %s1066_s7, %s1194_s2 }
  0x17   :  { %p1072_p10 = pnand %p1070_p9, %p1067_p8 }
  0x19   :  { %1075 = shalt.err (!%p1072_p10)
}
  0x1a   :  { %s1076_s12 = scalar_lea.vmem %s33_s30, 8192  ;;  %p1081_p12 = scmp.lt.s32.totalorder %s33_s30, %s33_s30 }
  0x1b   :  { %p1077_p11 = scmp.ne.s32.totalorder %s33_s30, %s1076_s12  ;;  %p1082_p13 = scmp.lt.s32.totalorder %s1076_s12, %s1076_s12 }
  0x1d   :  { %p1083_p0 = por %p1082_p13, %p1081_p12 }
  0x1f   :  { %p1084_p1 = pnand %p1083_p0, %p1077_p11 }
  0x21   :  { %1087 = shalt.err (!%p1084_p1)
}
  0x22   :  { %s1120_s1 = smov 64   ;;  %s1121_s13 = smov 4  }
  0x23   :  { %38 = dma.hbm_to_vmem [thread:$0]  %s1194_s2, 8192, %s33_s30, [#allocation7], %s1120_s1, %s1120_s1, %s1121_s13  }
  0x24   :  { %1110 = dma.done.wait [#allocation4], 1024  }
  0x25   :  { %1111 = vsyncadd [#allocation4], 4294966272 }
  0x26   :  { %1112 = dma.done.wait [#allocation7], 8192  }
  0x27   :  { %1113 = vsyncadd [#allocation7], 4294959104  ;;  %v185_v0 = vstv %s1192_s0  ;;  %v978_v1 = vld [vmem:[#allocation6 + $0x40] sm:$0xff]   ;;  %v982_v6 = vld [vmem:[#allocation6 + $0x48] sm:$0xff]   ;;  %s1122_s18 = smov [#allocation8]  }
  0x28   :  { %1042 = vrcp.f32 %v185_v0  ;;  %v979_v2 = vld [vmem:[#allocation6 + $0xc0] sm:$0xff]   ;;  %879 = vmatprep.subr.bf16.mxu0 %v978_v1  ;;  %v983_v7 = vld [vmem:[#allocation6 + $0xc8] sm:$0xff]   ;;  %v986_v10 = vld [vmem:[#allocation6 + $0x50] sm:$0xff]   ;;  %s793_s19 = sshll.u32 %s1122_s18, 4  ;;  %s794_s19 = int_to_ptr.vmem [resolvable:$true] %s793_s19 }
  0x29   :  { %v980_v3 = vld [vmem:[#allocation6] sm:$0xff]   ;;  %901 = vmatprep.subr.bf16.mxu1 %v979_v2  ;;  %v984_v8 = vld [vmem:[#allocation6 + $0x8] sm:$0xff]   ;;  %v987_v11 = vld [vmem:[#allocation6 + $0xd0] sm:$0xff]   ;;  %s1088_s20 = scalar_lea.vmem %s794_s19, 256  ;;  %p1093_p3 = scmp.lt.s32.totalorder %s794_s19, %s794_s19 }
  0x2a   :  { %v981_v4 = vld [vmem:[#allocation6 + $0x80] sm:$0xff]   ;;  %880 = vmatpush3.bf16.msra.mxu0 %v980_v3  ;;  %v985_v9 = vld [vmem:[#allocation6 + $0x88] sm:$0xff]   ;;  %v988_v12 = vld [vmem:[#allocation6 + $0x10] sm:$0xff]   ;;  %p1089_p2 = scmp.ne.s32.totalorder %s794_s19, %s1088_s20  ;;  %p1094_p4 = scmp.lt.s32.totalorder %s1088_s20, %s1088_s20 }
  0x2b   :  { %902 = vmatpush3.bf16.msra.mxu1 %v981_v4  ;;  %881 = vmatprep.subr.bf16.mxu0 %v982_v6  ;;  %v989_v13 = vld [vmem:[#allocation6 + $0x90] sm:$0xff]   ;;  %v990_v14 = vld [vmem:[#allocation6 + $0x58] sm:$0xff]   ;;  %v994_v18 = vld [vmem:[#allocation6 + $0x60] sm:$0xff]  }
  0x2c   :  { %903 = vmatprep.subr.bf16.mxu1 %v983_v7  ;;  %v991_v15 = vld [vmem:[#allocation6 + $0xd8] sm:$0xff]   ;;  %v995_v19 = vld [vmem:[#allocation6 + $0xe0] sm:$0xff]   ;;  %v998_v22 = vld [vmem:[#allocation6 + $0x68] sm:$0xff]   ;;  %p1095_p5 = por %p1094_p4, %p1093_p3 }
  0x2d   :  { %v992_v16 = vld [vmem:[#allocation6 + $0x18] sm:$0xff]   ;;  %v996_v20 = vld [vmem:[#allocation6 + $0x20] sm:$0xff]   ;;  %v999_v23 = vld [vmem:[#allocation6 + $0xe8] sm:$0xff]  }
  0x2e   :  { %882 = vmatpush3.bf16.msra.mxu0 %v984_v8  ;;  %v993_v17 = vld [vmem:[#allocation6 + $0x98] sm:$0xff]   ;;  %v997_v21 = vld [vmem:[#allocation6 + $0xa0] sm:$0xff]   ;;  %v1000_v24 = vld [vmem:[#allocation6 + $0x28] sm:$0xff]   ;;  %p1096_p6 = pnand %p1095_p5, %p1089_p2 }
  0x2f   :  { %904 = vmatpush3.bf16.msra.mxu1 %v985_v9  ;;  %883 = vmatprep.subr.bf16.mxu0 %v986_v10  ;;  %v1001_v25 = vld [vmem:[#allocation6 + $0xa8] sm:$0xff]   ;;  %v1002_v26 = vld [vmem:[#allocation6 + $0x70] sm:$0xff]   ;;  %v1006_v30 = vld [vmem:[#allocation6 + $0x78] sm:$0xff]  }
  0x30   :  { %905 = vmatprep.subr.bf16.mxu1 %v987_v11  ;;  %v1003_v27 = vld [vmem:[#allocation6 + $0xf0] sm:$0xff]   ;;  %v1007_v31 = vld [vmem:[#allocation6 + $0xf8] sm:$0xff]   ;;  %v48_v34 = vld [vmem:[#allocation3] sm:$0xff] }
  0x31   :  { %v1004_v28 = vld [vmem:[#allocation6 + $0x30] sm:$0xff]   ;;  %v1008_v32 = vld [vmem:[#allocation6 + $0x38] sm:$0xff]   ;;  %v52_v35 = vld [vmem:[#allocation3 + $0x20] sm:$0xff] }
  0x32   :  { %v1043_v5 = vpop.eup %1042  ;;  %884 = vmatpush3.bf16.msra.mxu0 %v988_v12  ;;  %v1005_v29 = vld [vmem:[#allocation6 + $0xb0] sm:$0xff]   ;;  %v1009_v33 = vld [vmem:[#allocation6 + $0xb8] sm:$0xff]   ;;  %v49_v36 = vld [vmem:[#allocation3 + $0x8] sm:$0xff]  ;;  %v807_v37 = vcombine.low %v48_v34, %v52_v35  ;;  %v808_v38 = vcombine.high %v48_v34, %v52_v35 }
  0x33   :  { %967 = vpush %v1043_v5  ;;  %906 = vmatpush3.bf16.msra.mxu1 %v989_v13  ;;  %885 = vmatprep.subr.bf16.mxu0 %v990_v14  ;;  %v53_v39 = vld [vmem:[#allocation3 + $0x28] sm:$0xff]  ;;  %v1010_v42 = vld [vmem:[#allocation6 + $0x140] sm:$0xff]   ;;  %v1018_v50 = vld [vmem:[#allocation6 + $0x150] sm:$0xff]  }
  0x34   :  { %907 = vmatprep.subr.bf16.mxu1 %v991_v15  ;;  %v809_v40 = vcombine.low %v49_v36, %v53_v39  ;;  %v810_v41 = vcombine.high %v49_v36, %v53_v39  ;;  %651 = vmatprep.mubr.bf16.mxu0 %v808_v38  ;;  %v1011_v43 = vld [vmem:[#allocation6 + $0x1c0] sm:$0xff]   ;;  %v1014_v46 = vld [vmem:[#allocation6 + $0x148] sm:$0xff]   ;;  %v1019_v51 = vld [vmem:[#allocation6 + $0x1d0] sm:$0xff]  }
  0x35   :  { %v1012_v44 = vld [vmem:[#allocation6 + $0x100] sm:$0xff]   ;;  %v1015_v47 = vld [vmem:[#allocation6 + $0x1c8] sm:$0xff]   ;;  %v1020_v52 = vld [vmem:[#allocation6 + $0x110] sm:$0xff]  }
  0x36   :  { %886 = vmatpush3.bf16.msra.mxu0 %v992_v16  ;;  %692 = vmatprep.mubr.bf16.mxu1 %v810_v41  ;;  %v1013_v45 = vld [vmem:[#allocation6 + $0x180] sm:$0xff]   ;;  %v1016_v48 = vld [vmem:[#allocation6 + $0x108] sm:$0xff]   ;;  %v1021_v53 = vld [vmem:[#allocation6 + $0x190] sm:$0xff]  }
  0x37   :  { %908 = vmatpush3.bf16.msra.mxu1 %v993_v17  ;;  %887 = vmatprep.subr.bf16.mxu0 %v994_v18  ;;  %v1017_v49 = vld [vmem:[#allocation6 + $0x188] sm:$0xff]   ;;  %v1022_v54 = vld [vmem:[#allocation6 + $0x158] sm:$0xff]   ;;  %v1026_v58 = vld [vmem:[#allocation6 + $0x160] sm:$0xff]  }
  0x38   :  { %909 = vmatprep.subr.bf16.mxu1 %v995_v19  ;;  %v1023_v55 = vld [vmem:[#allocation6 + $0x1d8] sm:$0xff]   ;;  %v1027_v59 = vld [vmem:[#allocation6 + $0x1e0] sm:$0xff]   ;;  %v1030_v62 = vld [vmem:[#allocation6 + $0x168] sm:$0xff]  }
  0x39   :  { %v1024_v56 = vld [vmem:[#allocation6 + $0x118] sm:$0xff]   ;;  %v1028_v60 = vld [vmem:[#allocation6 + $0x120] sm:$0xff]   ;;  %v1031_v63 = vld [vmem:[#allocation6 + $0x1e8] sm:$0xff]  }
  0x3a   :  { %888 = vmatpush3.bf16.msra.mxu0 %v996_v20  ;;  %v1025_v57 = vld [vmem:[#allocation6 + $0x198] sm:$0xff]   ;;  %v1029_v61 = vld [vmem:[#allocation6 + $0x1a0] sm:$0xff]   ;;  %v1032_v0 = vld [vmem:[#allocation6 + $0x128] sm:$0xff]  }
  0x3b   :  { %910 = vmatpush3.bf16.msra.mxu1 %v997_v21  ;;  %889 = vmatprep.subr.bf16.mxu0 %v998_v22  ;;  %v1033_v1 = vld [vmem:[#allocation6 + $0x1a8] sm:$0xff]   ;;  %v1034_v2 = vld [vmem:[#allocation6 + $0x170] sm:$0xff]   ;;  %v1038_v6 = vld [vmem:[#allocation6 + $0x178] sm:$0xff]  }
  0x3c   :  { %911 = vmatprep.subr.bf16.mxu1 %v999_v23  ;;  %v1035_v3 = vld [vmem:[#allocation6 + $0x1f0] sm:$0xff]   ;;  %v1039_v7 = vld [vmem:[#allocation6 + $0x1f8] sm:$0xff]   ;;  %v806_v20 = vld [vmem:[%s1195_s3] ss:$0 sm:$0xff] }
  0x3d   :  { %v1036_v4 = vld [vmem:[#allocation6 + $0x130] sm:$0xff]   ;;  %v1040_v8 = vld [vmem:[#allocation6 + $0x138] sm:$0xff]  }
  0x3e   :  { %890 = vmatpush3.bf16.msra.mxu0 %v1000_v24  ;;  %v1037_v5 = vld [vmem:[#allocation6 + $0x1b0] sm:$0xff]   ;;  %v1041_v9 = vld [vmem:[#allocation6 + $0x1b8] sm:$0xff]  }
  0x3f   :  { %912 = vmatpush3.bf16.msra.mxu1 %v1001_v25  ;;  %891 = vmatprep.subr.bf16.mxu0 %v1002_v26  ;;  %v50_v10 = vld [vmem:[#allocation3 + $0x10] sm:$0xff]  ;;  %v51_v14 = vld [vmem:[#allocation3 + $0x18] sm:$0xff] }
  0x40   :  { %913 = vmatprep.subr.bf16.mxu1 %v1003_v27  ;;  %v54_v11 = vld [vmem:[#allocation3 + $0x30] sm:$0xff]  ;;  %v55_v15 = vld [vmem:[#allocation3 + $0x38] sm:$0xff] }
  0x41   :  { %v811_v12 = vcombine.low %v50_v10, %v54_v11  ;;  %v812_v13 = vcombine.high %v50_v10, %v54_v11  ;;  %v813_v16 = vcombine.low %v51_v14, %v55_v15  ;;  %v814_v17 = vcombine.high %v51_v14, %v55_v15 }
  0x42   :  { %892 = vmatpush3.bf16.msra.mxu0 %v1004_v28 }
  0x43   :  { %914 = vmatpush3.bf16.msra.mxu1 %v1005_v29  ;;  %893 = vmatprep.subr.bf16.mxu0 %v1006_v30 }
  0x44   :  { %915 = vmatprep.subr.bf16.mxu1 %v1007_v31 }
  0x46   :  { %894 = vmatpush3.bf16.msra.mxu0 %v1008_v32 }
  0x47   :  { %916 = vmatpush3.bf16.msra.mxu1 %v1009_v33  ;;  %923 = vmatprep.subr.bf16.mxu0 %v1010_v42 }
  0x48   :  { %945 = vmatprep.subr.bf16.mxu1 %v1011_v43 }
  0x49   :  { %652 = vmatmul.mubr.bf16.vlgmr.msra.gmra.mrb[0].mxu0 %v807_v37 }
  0x4a   :  { %693 = vmatmul.mubr.bf16.vlgmr.msra.gmra.mrb[0].mxu1 %v809_v40  ;;  %924 = vmatpush3.bf16.msra.mxu0 %v1012_v44 }
  0x4b   :  { %946 = vmatpush3.bf16.msra.mxu1 %v1013_v45  ;;  %925 = vmatprep.subr.bf16.mxu0 %v1014_v46 }
  0x4c   :  { %947 = vmatprep.subr.bf16.mxu1 %v1015_v47  ;;  %733 = vmatprep.mubr.bf16.mxu0 %v812_v13 }
  0x4d   :  { %774 = vmatprep.mubr.bf16.mxu1 %v814_v17 }
  0x4e   :  { %926 = vmatpush3.bf16.msra.mxu0 %v1016_v48 }
  0x4f   :  { %948 = vmatpush3.bf16.msra.mxu1 %v1017_v49  ;;  %927 = vmatprep.subr.bf16.mxu0 %v1018_v50 }
  0x50   :  { %949 = vmatprep.subr.bf16.mxu1 %v1019_v51 }
  0x52   :  { %928 = vmatpush3.bf16.msra.mxu0 %v1020_v52 }
  0x53   :  { %950 = vmatpush3.bf16.msra.mxu1 %v1021_v53  ;;  %929 = vmatprep.subr.bf16.mxu0 %v1022_v54 }
  0x54   :  { %951 = vmatprep.subr.bf16.mxu1 %v1023_v55 }
  0x56   :  { %930 = vmatpush3.bf16.msra.mxu0 %v1024_v56 }
  0x57   :  { %952 = vmatpush3.bf16.msra.mxu1 %v1025_v57  ;;  %931 = vmatprep.subr.bf16.mxu0 %v1026_v58 }
  0x58   :  { %953 = vmatprep.subr.bf16.mxu1 %v1027_v59 }
  0x5a   :  { %932 = vmatpush3.bf16.msra.mxu0 %v1028_v60 }
  0x5b   :  { %954 = vmatpush3.bf16.msra.mxu1 %v1029_v61  ;;  %933 = vmatprep.subr.bf16.mxu0 %v1030_v62 }
  0x5c   :  { %955 = vmatprep.subr.bf16.mxu1 %v1031_v63 }
  0x5e   :  { %934 = vmatpush3.bf16.msra.mxu0 %v1032_v0 }
  0x5f   :  { %956 = vmatpush3.bf16.msra.mxu1 %v1033_v1  ;;  %935 = vmatprep.subr.bf16.mxu0 %v1034_v2 }
  0x60   :  { %957 = vmatprep.subr.bf16.mxu1 %v1035_v3 }
  0x62   :  { %936 = vmatpush3.bf16.msra.mxu0 %v1036_v4 }
  0x63   :  { %958 = vmatpush3.bf16.msra.mxu1 %v1037_v5  ;;  %937 = vmatprep.subr.bf16.mxu0 %v1038_v6 }
  0x64   :  { %959 = vmatprep.subr.bf16.mxu1 %v1039_v7  ;;  %s968_s3 = spop %967 }
  0x65   :  { %v783_v48 = vstv %s968_s3 }
  0x66   :  { %938 = vmatpush3.bf16.msra.mxu0 %v1040_v8 }
  0x67   :  { %960 = vmatpush3.bf16.msra.mxu1 %v1041_v9 }
  0x69   :  { %734 = vmatmul.mubr.bf16.vlgmr.msra.gmra.mrb[4].mxu0 %v811_v12 }
  0x6a   :  { %775 = vmatmul.mubr.bf16.vlgmr.msra.gmra.mrb[4].mxu1 %v813_v16 }
 0x11c   :  { %v895_v18 = vpop.f32.mrb[0].mxu0 }
 0x11d   :  { %v917_v19 = vpop.f32.mrb[0].mxu1  ;;  %v896_v21 = vpop.f32.mrb[1].mxu0 }
 0x11e   :  { %v897_v22 = vadd.f32 %v896_v21, %v895_v18  ;;  %v918_v23 = vpop.f32.mrb[1].mxu1  ;;  %v898_v24 = vpop.f32.mrb[2].mxu0 }
 0x11f   :  { %v919_v25 = vadd.f32 %v918_v23, %v917_v19  ;;  %v920_v26 = vpop.f32.mrb[2].mxu1  ;;  %v899_v27 = vpop.f32.mrb[3].mxu0 }
 0x120   :  { %v654_v28 = vadd.f32 %v897_v22, %v806_v20  ;;  %v900_v29 = vadd.f32 %v899_v27, %v898_v24  ;;  %v921_v30 = vpop.f32.mrb[3].mxu1 }
 0x121   :  { %v922_v31 = vadd.f32 %v921_v30, %v920_v26 }
 0x122   :  { %v695_v32 = vadd.f32 %v919_v25, %v654_v28  ;;  %v657_v33 = vadd.f32 %v900_v29, %v806_v20 }
 0x124   :  { %v698_v34 = vadd.f32 %v922_v31, %v657_v33 }
 0x13c   :  { %v939_v35 = vpop.f32.mrb[4].mxu0 }
 0x13d   :  { %v961_v36 = vpop.f32.mrb[4].mxu1  ;;  %v940_v37 = vpop.f32.mrb[5].mxu0 }
 0x13e   :  { %v941_v38 = vadd.f32 %v940_v37, %v939_v35  ;;  %v962_v39 = vpop.f32.mrb[5].mxu1  ;;  %v942_v40 = vpop.f32.mrb[6].mxu0 }
 0x13f   :  { %v963_v41 = vadd.f32 %v962_v39, %v961_v36  ;;  %v964_v42 = vpop.f32.mrb[6].mxu1  ;;  %v943_v43 = vpop.f32.mrb[7].mxu0 }
 0x140   :  { %v736_v44 = vadd.f32 %v941_v38, %v695_v32  ;;  %v944_v45 = vadd.f32 %v943_v43, %v942_v40  ;;  %v965_v46 = vpop.f32.mrb[7].mxu1 }
 0x141   :  { %v966_v47 = vadd.f32 %v965_v46, %v964_v42 }
 0x142   :  { %v777_v49 = vadd.f32 %v963_v41, %v736_v44  ;;  %v739_v50 = vadd.f32 %v944_v45, %v698_v34 }
 0x144   :  { %v780_v51 = vadd.f32 %v966_v47, %v739_v50  ;;  %v784_v52 = vmul.f32 %v783_v48, %v777_v49 }
 0x146   :  { %v785_v53 = vmul.f32 %v783_v48, %v780_v51  ;;  %786 = vst [vmem:[#allocation8] sm:$0xff] %v784_v52 }
 0x148   :  { %787 = vst [vmem:[#allocation8 + $0x8] sm:$0xff] %v785_v53 }
 0x149   :  { %1099 = shalt.err (!%p1096_p6)
}
 0x14a   :  { %s1100_s23 = scalar_lea.hbm %s1196_s4, 256 }
 0x14b   :  { %p1101_p7 = scmp.ne.s32.totalorder %s1196_s4, %s1100_s23  ;;  %p1104_p8 = scmp.lt.u32.totalorder %s1100_s23, %s1196_s4 }
 0x14d   :  { %p1106_p9 = pnand %p1104_p8, %p1101_p7 }
 0x14f   :  { %1109 = shalt.err (!%p1106_p9)
}
 0x150   :  { %s1123_s28 = smov 128   ;;  %s1124_s29 = smov 8  }
 0x151   :  { %799 = dma.vmem_to_hbm [thread:$0]  %s794_s19, 256, %s1196_s4, [#allocation5], %s1123_s28, %s1123_s28, %s1124_s29  }
 0x152   :  { %1114 = dma.done.wait [#allocation5], 256  }
 0x153   :  { %1115 = vsyncadd [#allocation5], 4294967040 }
 0x154   :  { %803 = vsyncpa [#allocation4], 1 }
 0x155   :  { %804 = vsyncpa [#allocation7], 1 }
 0x156   :  { %805 = vsyncpa [#allocation5], 1 }

</bundles_post_ra>
